<compile_context>
chip_gen: v7x
topology: tpu7x:2x2x1
jax: 0.10.0
libtpu: 0.0.40
codegen_flags: <defaults>
</compile_context>

<pallas_src>
import jax
import jax.numpy as jnp
from jax.experimental import pallas as pl
from jax.experimental.pallas import tpu as pltpu


# ----------------------------------------------------------------------------
# Chunk planning (all static / trace-time Python)
# ----------------------------------------------------------------------------

def _split_bounds(extent, n_chunks, align):
    """Ascending boundaries [0, ..., extent] for ~equal chunks, with interior
    boundaries snapped down to multiples of `align` (deduped)."""
    n_chunks = max(1, min(n_chunks, extent))
    raw = [(i * extent) // n_chunks for i in range(n_chunks + 1)]
    bounds = [0]
    for b in raw[1:-1]:
        b = (b // align) * align
        if b > bounds[-1]:
            bounds.append(b)
    if extent > bounds[-1]:
        bounds.append(extent)
    return bounds


def _choose_chunks(rows, cols, itemsize,
                   target_bytes=4 * 1024 * 1024, max_chunks=8):
    """Pick a chunk axis and boundaries for the HBM->HBM DMA copy.

    Prefer chunking along rows (batch); if the batch dim is too small for the
    desired chunk count (tiny B, huge F), chunk along columns instead.
    """
    nbytes = rows * cols * itemsize
    want = max(1, min(max_chunks, (nbytes + target_bytes - 1) // target_bytes))
    sublane = max(1, 32 // itemsize)   # dtype-native sublane multiple
    if rows >= want:
        axis, extent, align = 0, rows, sublane
    else:
        axis, extent, align = 1, cols, 128
    return axis, _split_bounds(extent, want, align)


# ----------------------------------------------------------------------------
# Kernel: identity via chunked HBM->HBM async copies
# ----------------------------------------------------------------------------

def _make_dma_copy_kernel(axis, bounds):
    n_chunks = len(bounds) - 1

    def kernel(x_hbm, o_hbm, sem):
        # The empty nn.Sequential is the identity: copy input -> output.
        copies = []
        for j in range(n_chunks):                 # static unroll (few chunks)
            lo, hi = bounds[j], bounds[j + 1]
            if axis == 0:
                src, dst = x_hbm.at[lo:hi, :], o_hbm.at[lo:hi, :]
            else:
                src, dst = x_hbm.at[:, lo:hi], o_hbm.at[:, lo:hi]
            cp = pltpu.make_async_copy(src, dst, sem.at[j])
            cp.start()                            # issue every DMA first ...
            copies.append(cp)
        for cp in copies:                         # ... then wait on all
            cp.wait()

    return kernel


def _pallas_identity_copy(x2d):
    rows, cols = x2d.shape
    itemsize = jnp.dtype(x2d.dtype).itemsize
    nbytes = rows * cols * itemsize
    axis, bounds = _choose_chunks(rows, cols, itemsize)
    n_chunks = len(bounds) - 1

    return pl.pallas_call(
        _make_dma_copy_kernel(axis, bounds),
        out_shape=jax.ShapeDtypeStruct((rows, cols), x2d.dtype),
        # Raw HBM refs on both sides: the kernel manages all data movement.
        in_specs=[pl.BlockSpec(memory_space=pl.ANY)],
        out_specs=pl.BlockSpec(memory_space=pl.ANY),
        scratch_shapes=[pltpu.SemaphoreType.DMA((n_chunks,))],
        compiler_params=pltpu.CompilerParams(has_side_effects=True),
        cost_estimate=pl.CostEstimate(
            flops=0, transcendentals=0, bytes_accessed=2 * nbytes),
    )(x2d)


# ----------------------------------------------------------------------------
# Forward pass
# ----------------------------------------------------------------------------

@jax.jit
def mlp_model_forward(x: jax.Array) -> jax.Array:
    """Equivalent of MLP_model.forward: x.view(len(x), -1) then identity."""
    B = x.shape[0]
    F = 1
    for d in x.shape[1:]:
        F *= d
    # Glue: row-major flatten, identical semantics to torch.Tensor.view(B, -1).
    x2d = x.reshape(B, F)
    # The empty nn.Sequential -> identity, implemented as a chunked
    # HBM->HBM DMA copy (bypasses VMEM entirely).
    return _pallas_identity_copy(x2d)


if __name__ == "__main__":
    key = jax.random.PRNGKey(0)
    # Small NCHW input consistent with a typical image batch: (2, 4, 16, 16).
    x = jax.random.normal(key, (2, 4, 16, 16), dtype=jnp.float32)

    out = jax.block_until_ready(mlp_model_forward(x))

    # Reference (pure JAX): flatten + identity.
    ref = x.reshape(x.shape[0], -1)
    assert out.shape == (2, 4 * 16 * 16), out.shape
    assert out.dtype == x.dtype
    assert bool(jnp.allclose(out, ref)), "Pallas output mismatch vs reference"

    print("KERNEL_OK")
</pallas_src>

<mosaic_0001>
module attributes {stable_mosaic.version = 11 : i64} {
  func.func @kernel(%arg0: memref<2x1024xf32, #tpu.memory_space<any>>, %arg1: memref<2x1024xf32, #tpu.memory_space<any>>, %arg2: memref<1x!tpu.dma_semaphore, #tpu.memory_space<semaphore_mem>>) attributes {dimension_semantics = [], scalar_prefetch = 0 : i64, scratch_operands = 1 : i64, tpu.core_type = #tpu.core_type<tc>} {
    %c0_i32 = arith.constant 0 : i32
    %c0_i32_0 = arith.constant 0 : i32
    %c0_i32_1 = arith.constant 0 : i32
    %0 = tpu.memref_slice %arg0[%c0_i32_0, %c0_i32_1] : memref<2x1024xf32, #tpu.memory_space<any>> -> memref<2x1024xf32, #tpu.memory_space<any>>
    %c0_i32_2 = arith.constant 0 : i32
    %c0_i32_3 = arith.constant 0 : i32
    %1 = tpu.memref_slice %arg1[%c0_i32_2, %c0_i32_3] : memref<2x1024xf32, #tpu.memory_space<any>> -> memref<2x1024xf32, #tpu.memory_space<any>>
    %2 = tpu.memref_slice %arg2[%c0_i32] : memref<1x!tpu.dma_semaphore, #tpu.memory_space<semaphore_mem>> -> memref<1x!tpu.dma_semaphore, #tpu.memory_space<semaphore_mem>>
    %3 = tpu.memref_squeeze %2 : memref<1x!tpu.dma_semaphore, #tpu.memory_space<semaphore_mem>> -> memref<!tpu.dma_semaphore, #tpu.memory_space<semaphore_mem>>
    tpu.enqueue_dma source(%0 : memref<2x1024xf32, #tpu.memory_space<any>>) target(%1 : memref<2x1024xf32, #tpu.memory_space<any>>) target_semaphore(%3 : memref<!tpu.dma_semaphore, #tpu.memory_space<semaphore_mem>>)
    %c0_i32_4 = arith.constant 0 : i32
    %c0_i32_5 = arith.constant 0 : i32
    %c0_i32_6 = arith.constant 0 : i32
    %4 = tpu.memref_slice %arg0[%c0_i32_5, %c0_i32_6] : memref<2x1024xf32, #tpu.memory_space<any>> -> memref<2x1024xf32, #tpu.memory_space<any>>
    %c0_i32_7 = arith.constant 0 : i32
    %c0_i32_8 = arith.constant 0 : i32
    %5 = tpu.memref_slice %arg1[%c0_i32_7, %c0_i32_8] : memref<2x1024xf32, #tpu.memory_space<any>> -> memref<2x1024xf32, #tpu.memory_space<any>>
    %6 = tpu.memref_slice %arg2[%c0_i32_4] : memref<1x!tpu.dma_semaphore, #tpu.memory_space<semaphore_mem>> -> memref<1x!tpu.dma_semaphore, #tpu.memory_space<semaphore_mem>>
    %7 = tpu.memref_squeeze %6 : memref<1x!tpu.dma_semaphore, #tpu.memory_space<semaphore_mem>> -> memref<!tpu.dma_semaphore, #tpu.memory_space<semaphore_mem>>
    tpu.wait_dma2 semaphore(%7 : memref<!tpu.dma_semaphore, #tpu.memory_space<semaphore_mem>>) src(%4 : memref<2x1024xf32, #tpu.memory_space<any>>) dst(%5 : memref<2x1024xf32, #tpu.memory_space<any>>)
    return
  }
}

</mosaic_0001>

<bundles_post_ra>
// kernel: mlp_model_forward.1
= control target key start
LH: loop header
LB: loop body
LE: loop exit
PB: predicated region body
PF: predicated region fallthrough
CT: control target
= control target key end

     0   :  { %s77_s0 = inlined_call_operand.vmem [shape: f32[2,1024], index: 0, kind: input, shape index: {}]   ;;  %s78_s1 = inlined_call_operand.hbm [shape: f32[2,1024], index: 1, kind: output, shape index: {}]  }
   0x1   :  { %s13_s8 = sshll.u32 %s77_s0, 4  ;;  %s14_s8 = int_to_ptr.vmem [resolvable:$true] %s13_s8 }
   0x2   :  { %s28_s9 = scalar_lea.vmem %s14_s8, 256  ;;  %p33_p1 = scmp.lt.s32.totalorder %s14_s8, %s14_s8 }
   0x3   :  { %p29_p0 = scmp.ne.s32.totalorder %s14_s8, %s28_s9  ;;  %p34_p2 = scmp.lt.s32.totalorder %s28_s9, %s28_s9 }
   0x5   :  { %p35_p3 = por %p34_p2, %p33_p1 }
   0x7   :  { %p36_p4 = pnand %p35_p3, %p29_p0 }
   0x9   :  { %39 = shalt.err (!%p36_p4)  }
   0xa   :  { %s40_s12 = scalar_lea.hbm %s78_s1, 256 }
   0xb   :  { %p41_p5 = scmp.ne.s32.totalorder %s78_s1, %s40_s12  ;;  %p44_p6 = scmp.lt.u32.totalorder %s40_s12, %s78_s1 }
   0xd   :  { %p46_p7 = pnand %p44_p6, %p41_p5 }
   0xf   :  { %49 = shalt.err (!%p46_p7)  }
  0x10   :  { %16 = dma.vmem_to_hbm [thread:$0]  %s14_s8, 256, %s78_s1, [#allocation2] }
  0x11   :  { %50 = dma.done.wait [#allocation2], 256 }
  0x12   :  { %51 = vsyncadd [#allocation2], 4294967040 }
  0x13   :  { %21 = vsyncmov [#allocation2] }
  0x16   :  { %s22_s18 = vpop.sfrf %21 }
  0x17   :  { %p27_p8 = scmp.ne.s32.totalorder %s22_s18, 0 }
  0x19   :  { %26 = shalt.err (%p27_p8)  }

</bundles_post_ra>
